<compile_context>
chip_gen: v7x
topology: tpu7x:2x2x1
jax: 0.10.0
libtpu: 0.0.40
codegen_flags: <defaults>
</compile_context>

<pallas_src>
import functools

import jax
import jax.numpy as jnp
from jax import lax
from jax.experimental import pallas as pl
from jax.experimental.pallas import tpu as pltpu

NEG_SLOPE = 0.01     # nn.LeakyReLU default
BN_EPS = 1e-5        # nn.BatchNorm1d default
NCH = 32             # conv output channels
HID = 128            # fc1 width
RB = 16              # batch rows per conv sub-block (one packed bf16 sublane tile)
MAX_TB = 128         # batch rows per grid step at full size


def _leaky(x):
    # LeakyReLU with slope 0.01 < 1  ->  max(x, 0.01 * x)
    return jnp.maximum(x, NEG_SLOPE * x)


def _round_up(x, m):
    return ((x + m - 1) // m) * m


# ---------------------------------------------------------------------------
# Fused kernel: one grid step processes TB batch rows end-to-end.
#   wsm_ref  : SMEM [NCH, 8]      f32  cols 0..4 = BN-folded conv taps, col 5 = bias
#   taps_ref : VMEM [6, TB, Jp]   f32  shifted signal slabs (wrapper-built im2col)
#   w1r_ref  : VMEM [NCH, Jp, HID] cdt fc1 weight regrouped per conv channel
#   b1_ref   : VMEM [1, HID]      f32
#   w2t_ref  : VMEM [HID, Cp]     cdt  fc2 weight transposed, lane-padded
#   b2_ref   : VMEM [1, Cp]       f32
#   o_ref    : VMEM [TB, Cp]      f32
#   feat_ref : VMEM [NCH, TB, Jp] cdt  scratch: pooled features
#   h_ref    : VMEM [TB, HID]     f32  scratch: fc1 accumulator
# ---------------------------------------------------------------------------
def _fused_cnn_kernel(wsm_ref, taps_ref, w1r_ref, b1_ref, w2t_ref, b2_ref,
                      o_ref, feat_ref, h_ref):
    cdt = feat_ref.dtype
    tb = feat_ref.shape[1]
    n_rb = tb // RB

    # --- Stage 1: Conv1d(k=5,p=2) + BN(folded) + MaxPool(2,2) + LeakyReLU ----
    # Pure aligned VPU work; dense full-tile stores per (channel, 16-row block).
    for b in range(n_rb):                      # small static loop (<= 8 iters)
        r0 = b * RB

        def ch_body(c, carry, r0=r0):
            w0 = wsm_ref[c, 0]
            w1 = wsm_ref[c, 1]
            w2 = wsm_ref[c, 2]
            w3 = wsm_ref[c, 3]
            w4 = wsm_ref[c, 4]
            bias = wsm_ref[c, 5]
            s0 = taps_ref[0, r0:r0 + RB, :]
            s1 = taps_ref[1, r0:r0 + RB, :]
            s2 = taps_ref[2, r0:r0 + RB, :]
            s3 = taps_ref[3, r0:r0 + RB, :]
            s4 = taps_ref[4, r0:r0 + RB, :]
            s5 = taps_ref[5, r0:r0 + RB, :]
            # conv outputs at positions 2j (even) and 2j+1 (odd)
            even = w0 * s0 + w1 * s1 + w2 * s2 + w3 * s3 + w4 * s4
            odd = w0 * s1 + w1 * s2 + w2 * s3 + w3 * s4 + w4 * s5
            # pool first (LeakyReLU is monotone, bias is shared by the pair)
            y = _leaky(jnp.maximum(even, odd) + bias)
            feat_ref[c, r0:r0 + RB, :] = y.astype(cdt)
            return carry

        lax.fori_loop(0, NCH, ch_body, 0)

    # --- Stage 2: fc1 as a per-channel K-blocked matmul into f32 VMEM acc ----
    h_ref[...] = jnp.broadcast_to(b1_ref[...], h_ref.shape)

    def fc1_body(c, carry):
        h_ref[...] += jnp.dot(feat_ref[c], w1r_ref[c],
                              preferred_element_type=jnp.float32)
        return carry

    lax.fori_loop(0, NCH, fc1_body, 0)

    # --- Stage 3: LeakyReLU + fc2 (lane-dense [TB, 128] output) --------------
    h = _leaky(h_ref[...]).astype(cdt)
    o_ref[...] = jnp.dot(h, w2t_ref[...],
                         preferred_element_type=jnp.float32) + b2_ref[...]


@functools.partial(jax.jit, static_argnames=("compute_dtype",))
def cnn_forward(x, params, *, compute_dtype=jnp.bfloat16):
    """x: [B, 1, L] float32 (PyTorch NCL layout, L even). Returns [B, C]."""
    conv_w, conv_b = params["conv_w"], params["conv_b"]          # [32,1,5], [32]
    gamma, beta = params["bn_gamma"], params["bn_beta"]          # [32]
    rmean, rvar = params["bn_rmean"], params["bn_rvar"]          # [32]
    w1, b1 = params["fc1_w"], params["fc1_b"]                    # [128, 32*J], [128]
    w2, b2 = params["fc2_w"], params["fc2_b"]                    # [C, 128], [C]

    B, _, L = x.shape
    assert L % 2 == 0, "even input length assumed (matches MaxPool1d(2,2) usage)"
    J = L // 2
    Jp = _round_up(max(J, 1), 128)          # lane-dense position axis
    C = w2.shape[0]
    Cp = _round_up(max(C, 1), 128)          # lane-dense output
    cdt = jnp.dtype(compute_dtype)

    TB = min(MAX_TB, _round_up(B, RB))      # batch rows per grid step
    B_pad = _round_up(B, TB)
    nb = B_pad // TB

    # --- glue: pad + even/odd de-interleave + six shifted tap slabs ----------
    x2 = x[:, 0, :].astype(jnp.float32)                      # [B, L]
    xp = jnp.pad(x2, ((0, 0), (2, 2)))                       # [B, L+4]
    xe = xp[:, 0::2]                                          # [B, J+2]  xp[2i]
    xo = xp[:, 1::2]                                          # [B, J+2]  xp[2i+1]
    #   out[2j]   = w0*xe[j]   + w1*xo[j]   + w2*xe[j+1] + w3*xo[j+1] + w4*xe[j+2]
    #   out[2j+1] = w0*xo[j]   + w1*xe[j+1] + w2*xo[j+1] + w3*xe[j+2] + w4*xo[j+2]
    taps = jnp.stack([xe[:, 0:J], xo[:, 0:J],
                      xe[:, 1:J + 1], xo[:, 1:J + 1],
                      xe[:, 2:J + 2], xo[:, 2:J + 2]], axis=0)      # [6, B, J]
    taps = jnp.pad(taps, ((0, 0), (0, B_pad - B), (0, Jp - J)))     # [6, B_pad, Jp]

    # --- glue: fold conv bias + eval-mode BN into per-channel scalars --------
    scale = gamma / jnp.sqrt(rvar + BN_EPS)                  # [32]
    w_eff = conv_w[:, 0, :] * scale[:, None]                 # [32, 5]
    bias = (beta + (conv_b - rmean) * scale)[:, None]        # [32, 1]
    wsm = jnp.concatenate(
        [w_eff, bias, jnp.zeros((NCH, 2), jnp.float32)], axis=1)    # [32, 8] f32

    # --- glue: regroup fc weights so the kernel never flattens / transposes --
    # flat[b, c*J + j] == feat[b, c, j]   ->   w1r[c, j, m] = w1[m, c*J + j]
    w1r = w1.reshape(HID, NCH, J).transpose(1, 2, 0)                # [32, J, 128]
    w1r = jnp.pad(w1r, ((0, 0), (0, Jp - J), (0, 0))).astype(cdt)   # [32, Jp, 128]
    w2t = jnp.pad(w2.T, ((0, 0), (0, Cp - C))).astype(cdt)          # [128, Cp]
    b1r = b1.reshape(1, HID).astype(jnp.float32)
    b2p = jnp.pad(b2, (0, Cp - C)).reshape(1, Cp).astype(jnp.float32)

    flops = int(B_pad) * (2 * NCH * 5 * L + 2 * NCH * Jp * HID + 2 * HID * Cp)
    bytes_accessed = int(6 * B_pad * Jp * 4 + NCH * Jp * HID * cdt.itemsize
                         + HID * Cp * cdt.itemsize + B_pad * Cp * 4
                         + NCH * 8 * 4 + 2 * HID * 4)

    out = pl.pallas_call(
        _fused_cnn_kernel,
        out_shape=jax.ShapeDtypeStruct((B_pad, Cp), jnp.float32),
        grid_spec=pltpu.PrefetchScalarGridSpec(
            num_scalar_prefetch=0,
            grid=(nb,),
            in_specs=[
                pl.BlockSpec(memory_space=pltpu.MemorySpace.SMEM),   # wsm
                pl.BlockSpec((6, TB, Jp), lambda i: (0, i, 0)),      # taps
                pl.BlockSpec((NCH, Jp, HID), lambda i: (0, 0, 0)),   # w1r (resident)
                pl.BlockSpec((1, HID), lambda i: (0, 0)),            # b1
                pl.BlockSpec((HID, Cp), lambda i: (0, 0)),           # w2t (resident)
                pl.BlockSpec((1, Cp), lambda i: (0, 0)),             # b2
            ],
            out_specs=pl.BlockSpec((TB, Cp), lambda i: (i, 0)),
            scratch_shapes=[
                pltpu.VMEM((NCH, TB, Jp), cdt),       # pooled features
                pltpu.VMEM((TB, HID), jnp.float32),   # fc1 accumulator
            ],
        ),
        compiler_params=pltpu.CompilerParams(
            dimension_semantics=("parallel",),
            vmem_limit_bytes=48 * 1024 * 1024,   # bf16 full-size config ~32 MiB
        ),
        cost_estimate=pl.CostEstimate(flops=flops, transcendentals=0,
                                      bytes_accessed=bytes_accessed),
    )(wsm, taps, w1r, b1r, w2t, b2p)

    return out[:B, :C]


# ---------------------------------------------------------------------------
# Pure-JAX reference with identical semantics (sanity check).
# ---------------------------------------------------------------------------
def reference_forward(x, params):
    conv_w, conv_b = params["conv_w"], params["conv_b"]
    gamma, beta = params["bn_gamma"], params["bn_beta"]
    rmean, rvar = params["bn_rmean"], params["bn_rvar"]
    w1, b1, w2, b2 = params["fc1_w"], params["fc1_b"], params["fc2_w"], params["fc2_b"]
    B, _, L = x.shape
    J = L // 2
    y = jax.lax.conv_general_dilated(
        x, conv_w, window_strides=(1,), padding=((2, 2),),
        dimension_numbers=("NCH", "OIH", "NCH"))
    y = y + conv_b[None, :, None]
    y = (y - rmean[None, :, None]) / jnp.sqrt(rvar + BN_EPS)[None, :, None]
    y = y * gamma[None, :, None] + beta[None, :, None]
    y = jnp.where(y > 0, y, NEG_SLOPE * y)
    y = jnp.max(y.reshape(B, y.shape[1], J, 2), axis=-1)
    flat = y.reshape(B, -1)
    h = flat @ w1.T + b1
    h = jnp.where(h > 0, h, NEG_SLOPE * h)
    return h @ w2.T + b2


def make_params(key, input_size, num_classes):
    F = NCH * (input_size // 2)
    ks = jax.random.split(key, 10)
    return {
        "conv_w": 0.2 * jax.random.normal(ks[0], (NCH, 1, 5), jnp.float32),
        "conv_b": 0.1 * jax.random.normal(ks[1], (NCH,), jnp.float32),
        "bn_gamma": 1.0 + 0.1 * jax.random.normal(ks[2], (NCH,), jnp.float32),
        "bn_beta": 0.1 * jax.random.normal(ks[3], (NCH,), jnp.float32),
        "bn_rmean": 0.1 * jax.random.normal(ks[4], (NCH,), jnp.float32),
        "bn_rvar": 0.5 + jnp.abs(jax.random.normal(ks[5], (NCH,), jnp.float32)),
        "fc1_w": jax.random.normal(ks[6], (HID, F), jnp.float32) / jnp.sqrt(F),
        "fc1_b": 0.1 * jax.random.normal(ks[7], (HID,), jnp.float32),
        "fc2_w": jax.random.normal(ks[8], (num_classes, HID), jnp.float32) / jnp.sqrt(HID),
        "fc2_b": 0.1 * jax.random.normal(ks[9], (num_classes,), jnp.float32),
    }


if __name__ == "__main__":
    # small shapes consistent with the module (default input_size=2048 scaled down)
    input_size, num_classes, batch = 64, 5, 10
    key = jax.random.PRNGKey(0)
    kx, kp = jax.random.split(key)
    x = jax.random.normal(kx, (batch, 1, input_size), jnp.float32)  # NCL like PyTorch
    params = make_params(kp, input_size, num_classes)

    ref = jax.block_until_ready(reference_forward(x, params))

    # bf16 matmul-input default path (f32 VPU conv + f32 accumulation everywhere)
    out_bf16 = jax.block_until_ready(cnn_forward(x, params))
    assert out_bf16.shape == (batch, num_classes), out_bf16.shape
    assert jnp.allclose(out_bf16, ref, rtol=5e-2, atol=5e-2), (out_bf16, ref)

    # full f32 path
    out_f32 = jax.block_until_ready(
        cnn_forward(x, params, compute_dtype=jnp.float32))
    assert out_f32.shape == (batch, num_classes), out_f32.shape
    assert jnp.allclose(out_f32, ref, rtol=1e-2, atol=1e-2), (out_f32, ref)

    print("KERNEL_OK")
</pallas_src>

<mosaic_0001>
module attributes {stable_mosaic.version = 11 : i64} {
  func.func @_fused_cnn_kernel(%arg0: i32, %arg1: memref<32x8xf32, #tpu.memory_space<smem>>, %arg2: memref<6x16x128xf32, #tpu.memory_space<vmem>>, %arg3: memref<32x128x128xbf16, #tpu.memory_space<vmem>>, %arg4: memref<1x128xf32, #tpu.memory_space<vmem>>, %arg5: memref<128x128xbf16, #tpu.memory_space<vmem>>, %arg6: memref<1x128xf32, #tpu.memory_space<vmem>>, %arg7: memref<16x128xf32, #tpu.memory_space<vmem>>, %arg8: memref<32x16x128xbf16, #tpu.memory_space<vmem>>, %arg9: memref<16x128xf32, #tpu.memory_space<vmem>>) attributes {dimension_semantics = [#tpu.dimension_semantics<parallel>], iteration_bounds = array<i64: 1>, scalar_prefetch = 0 : i64, scratch_operands = 2 : i64, tpu.core_type = #tpu.core_type<tc>, window_params = [{transform_indices = @transform_0, window_bounds = array<i64: 32, 8>}, {transform_indices = @transform_1, window_bounds = array<i64: 6, 16, 128>}, {pipeline_mode = #tpu.pipeline_mode<synchronous>, transform_indices = @transform_2, window_bounds = array<i64: 32, 128, 128>}, {pipeline_mode = #tpu.pipeline_mode<synchronous>, transform_indices = @transform_3, window_bounds = array<i64: 1, 128>}, {pipeline_mode = #tpu.pipeline_mode<synchronous>, transform_indices = @transform_4, window_bounds = array<i64: 128, 128>}, {pipeline_mode = #tpu.pipeline_mode<synchronous>, transform_indices = @transform_5, window_bounds = array<i64: 1, 128>}, {transform_indices = @transform_6, window_bounds = array<i64: 16, 128>}]} {
    %c0_i32 = arith.constant 0 : i32
    %c32_i32 = arith.constant 32 : i32
    %0 = arith.addi %c0_i32, %c32_i32 : i32
    %c1_i32 = arith.constant 1 : i32
    scf.for %arg10 = %c0_i32 to %0 step %c1_i32  : i32 {
      %17 = arith.index_cast %arg10 : i32 to index
      %c0_17 = arith.constant 0 : index
      %18 = memref.load %arg1[%17, %c0_17] : memref<32x8xf32, #tpu.memory_space<smem>>
      %19 = arith.index_cast %arg10 : i32 to index
      %c1 = arith.constant 1 : index
      %20 = memref.load %arg1[%19, %c1] : memref<32x8xf32, #tpu.memory_space<smem>>
      %21 = arith.index_cast %arg10 : i32 to index
      %c2 = arith.constant 2 : index
      %22 = memref.load %arg1[%21, %c2] : memref<32x8xf32, #tpu.memory_space<smem>>
      %23 = arith.index_cast %arg10 : i32 to index
      %c3 = arith.constant 3 : index
      %24 = memref.load %arg1[%23, %c3] : memref<32x8xf32, #tpu.memory_space<smem>>
      %25 = arith.index_cast %arg10 : i32 to index
      %c4 = arith.constant 4 : index
      %26 = memref.load %arg1[%25, %c4] : memref<32x8xf32, #tpu.memory_space<smem>>
      %27 = arith.index_cast %arg10 : i32 to index
      %c5 = arith.constant 5 : index
      %28 = memref.load %arg1[%27, %c5] : memref<32x8xf32, #tpu.memory_space<smem>>
      %c0_18 = arith.constant 0 : index
      %c0_19 = arith.constant 0 : index
      %c0_20 = arith.constant 0 : index
      %29 = vector.load %arg2[%c0_18, %c0_19, %c0_20] : memref<6x16x128xf32, #tpu.memory_space<vmem>>, vector<1x16x128xf32>
      %30 = vector.shape_cast %29 : vector<1x16x128xf32> to vector<16x128xf32>
      %c1_21 = arith.constant 1 : index
      %c0_22 = arith.constant 0 : index
      %c0_23 = arith.constant 0 : index
      %31 = vector.load %arg2[%c1_21, %c0_22, %c0_23] : memref<6x16x128xf32, #tpu.memory_space<vmem>>, vector<1x16x128xf32>
      %32 = vector.shape_cast %31 : vector<1x16x128xf32> to vector<16x128xf32>
      %c2_24 = arith.constant 2 : index
      %c0_25 = arith.constant 0 : index
      %c0_26 = arith.constant 0 : index
      %33 = vector.load %arg2[%c2_24, %c0_25, %c0_26] : memref<6x16x128xf32, #tpu.memory_space<vmem>>, vector<1x16x128xf32>
      %34 = vector.shape_cast %33 : vector<1x16x128xf32> to vector<16x128xf32>
      %c3_27 = arith.constant 3 : index
      %c0_28 = arith.constant 0 : index
      %c0_29 = arith.constant 0 : index
      %35 = vector.load %arg2[%c3_27, %c0_28, %c0_29] : memref<6x16x128xf32, #tpu.memory_space<vmem>>, vector<1x16x128xf32>
      %36 = vector.shape_cast %35 : vector<1x16x128xf32> to vector<16x128xf32>
      %c4_30 = arith.constant 4 : index
      %c0_31 = arith.constant 0 : index
      %c0_32 = arith.constant 0 : index
      %37 = vector.load %arg2[%c4_30, %c0_31, %c0_32] : memref<6x16x128xf32, #tpu.memory_space<vmem>>, vector<1x16x128xf32>
      %38 = vector.shape_cast %37 : vector<1x16x128xf32> to vector<16x128xf32>
      %c5_33 = arith.constant 5 : index
      %c0_34 = arith.constant 0 : index
      %c0_35 = arith.constant 0 : index
      %39 = vector.load %arg2[%c5_33, %c0_34, %c0_35] : memref<6x16x128xf32, #tpu.memory_space<vmem>>, vector<1x16x128xf32>
      %40 = vector.shape_cast %39 : vector<1x16x128xf32> to vector<16x128xf32>
      %41 = vector.broadcast %18 : f32 to vector<16x128xf32>
      %42 = arith.mulf %41, %30 : vector<16x128xf32>
      %43 = vector.broadcast %20 : f32 to vector<16x128xf32>
      %44 = arith.mulf %43, %32 : vector<16x128xf32>
      %45 = arith.addf %42, %44 : vector<16x128xf32>
      %46 = vector.broadcast %22 : f32 to vector<16x128xf32>
      %47 = arith.mulf %46, %34 : vector<16x128xf32>
      %48 = arith.addf %45, %47 : vector<16x128xf32>
      %49 = vector.broadcast %24 : f32 to vector<16x128xf32>
      %50 = arith.mulf %49, %36 : vector<16x128xf32>
      %51 = arith.addf %48, %50 : vector<16x128xf32>
      %52 = vector.broadcast %26 : f32 to vector<16x128xf32>
      %53 = arith.mulf %52, %38 : vector<16x128xf32>
      %54 = arith.addf %51, %53 : vector<16x128xf32>
      %55 = vector.broadcast %18 : f32 to vector<16x128xf32>
      %56 = arith.mulf %55, %32 : vector<16x128xf32>
      %57 = vector.broadcast %20 : f32 to vector<16x128xf32>
      %58 = arith.mulf %57, %34 : vector<16x128xf32>
      %59 = arith.addf %56, %58 : vector<16x128xf32>
      %60 = vector.broadcast %22 : f32 to vector<16x128xf32>
      %61 = arith.mulf %60, %36 : vector<16x128xf32>
      %62 = arith.addf %59, %61 : vector<16x128xf32>
      %63 = vector.broadcast %24 : f32 to vector<16x128xf32>
      %64 = arith.mulf %63, %38 : vector<16x128xf32>
      %65 = arith.addf %62, %64 : vector<16x128xf32>
      %66 = vector.broadcast %26 : f32 to vector<16x128xf32>
      %67 = arith.mulf %66, %40 : vector<16x128xf32>
      %68 = arith.addf %65, %67 : vector<16x128xf32>
      %69 = arith.maximumf %54, %68 : vector<16x128xf32>
      %70 = vector.broadcast %28 : f32 to vector<16x128xf32>
      %71 = arith.addf %69, %70 : vector<16x128xf32>
      %cst_36 = arith.constant 0.00999999977 : f32
      %72 = vector.broadcast %cst_36 : f32 to vector<16x128xf32>
      %73 = arith.mulf %72, %71 : vector<16x128xf32>
      %74 = arith.maximumf %71, %73 : vector<16x128xf32>
      %75 = arith.truncf %74 : vector<16x128xf32> to vector<16x128xbf16>
      %76 = arith.index_cast %arg10 : i32 to index
      %c0_37 = arith.constant 0 : index
      %c0_38 = arith.constant 0 : index
      %77 = vector.load %arg8[%76, %c0_37, %c0_38] : memref<32x16x128xbf16, #tpu.memory_space<vmem>>, vector<1x16x128xbf16>
      %78 = vector.shape_cast %77 : vector<1x16x128xbf16> to vector<16x128xbf16>
      %79 = vector.shape_cast %75 : vector<16x128xbf16> to vector<1x16x128xbf16>
      tpu.vector_store %arg8[%76, %c0_37, %c0_38], %79 {strides = array<i32>} : memref<32x16x128xbf16, #tpu.memory_space<vmem>>, vector<1x16x128xbf16>,
    }
    %c32_i32_0 = arith.constant 32 : i32
    %c0 = arith.constant 0 : index
    %c0_1 = arith.constant 0 : index
    %1 = vector.load %arg4[%c0, %c0_1] : memref<1x128xf32, #tpu.memory_space<vmem>>, vector<1x128xf32>
    %2 = vector.shape_cast %1 : vector<1x128xf32> to vector<1x128xf32>
    %3 = vector.broadcast %2 : vector<1x128xf32> to vector<16x128xf32>
    %c0_2 = arith.constant 0 : index
    %c0_3 = arith.constant 0 : index
    %4 = vector.load %arg9[%c0_2, %c0_3] : memref<16x128xf32, #tpu.memory_space<vmem>>, vector<16x128xf32>
    tpu.vector_store %arg9[%c0_2, %c0_3], %3 {strides = array<i32>} : memref<16x128xf32, #tpu.memory_space<vmem>>, vector<16x128xf32>,
    %c0_i32_4 = arith.constant 0 : i32
    %c32_i32_5 = arith.constant 32 : i32
    %5 = arith.addi %c0_i32_4, %c32_i32_5 : i32
    %c1_i32_6 = arith.constant 1 : i32
    scf.for %arg10 = %c0_i32_4 to %5 step %c1_i32_6  : i32 {
      %c0_17 = arith.constant 0 : index
      %c0_18 = arith.constant 0 : index
      %17 = vector.load %arg9[%c0_17, %c0_18] : memref<16x128xf32, #tpu.memory_space<vmem>>, vector<16x128xf32>
      %18 = arith.index_cast %arg10 : i32 to index
      %c0_19 = arith.constant 0 : index
      %c0_20 = arith.constant 0 : index
      %19 = vector.load %arg8[%18, %c0_19, %c0_20] : memref<32x16x128xbf16, #tpu.memory_space<vmem>>, vector<1x16x128xbf16>
      %20 = vector.shape_cast %19 : vector<1x16x128xbf16> to vector<16x128xbf16>
      %21 = arith.index_cast %arg10 : i32 to index
      %c0_21 = arith.constant 0 : index
      %c0_22 = arith.constant 0 : index
      %22 = vector.load %arg3[%21, %c0_21, %c0_22] : memref<32x128x128xbf16, #tpu.memory_space<vmem>>, vector<1x128x128xbf16>
      %23 = vector.shape_cast %22 : vector<1x128x128xbf16> to vector<128x128xbf16>
      %cst_23 = arith.constant dense<0.000000e+00> : vector<16x128xf32>
      %24 = tpu.matmul %20, %23, %cst_23 {dimension_numbers = #tpu.dot_dimension_numbers<[1], [0], [0], [1], [0, 0, 1, 1], [], []>} : vector<16x128xbf16>, vector<128x128xbf16>, vector<16x128xf32> -> vector<16x128xf32>
      %25 = arith.addf %17, %24 : vector<16x128xf32>
      %c0_24 = arith.constant 0 : index
      %c0_25 = arith.constant 0 : index
      %26 = vector.load %arg9[%c0_24, %c0_25] : memref<16x128xf32, #tpu.memory_space<vmem>>, vector<16x128xf32>
      tpu.vector_store %arg9[%c0_24, %c0_25], %25 {strides = array<i32>} : memref<16x128xf32, #tpu.memory_space<vmem>>, vector<16x128xf32>,
    }
    %c32_i32_7 = arith.constant 32 : i32
    %c0_8 = arith.constant 0 : index
    %c0_9 = arith.constant 0 : index
    %6 = vector.load %arg9[%c0_8, %c0_9] : memref<16x128xf32, #tpu.memory_space<vmem>>, vector<16x128xf32>
    %cst = arith.constant 0.00999999977 : f32
    %7 = vector.broadcast %cst : f32 to vector<16x128xf32>
    %8 = arith.mulf %7, %6 : vector<16x128xf32>
    %9 = arith.maximumf %6, %8 : vector<16x128xf32>
    %10 = arith.truncf %9 : vector<16x128xf32> to vector<16x128xbf16>
    %c0_10 = arith.constant 0 : index
    %c0_11 = arith.constant 0 : index
    %11 = vector.load %arg5[%c0_10, %c0_11] : memref<128x128xbf16, #tpu.memory_space<vmem>>, vector<128x128xbf16>
    %cst_12 = arith.constant dense<0.000000e+00> : vector<16x128xf32>
    %12 = tpu.matmul %10, %11, %cst_12 {dimension_numbers = #tpu.dot_dimension_numbers<[1], [0], [0], [1], [0, 0, 1, 1], [], []>} : vector<16x128xbf16>, vector<128x128xbf16>, vector<16x128xf32> -> vector<16x128xf32>
    %c0_13 = arith.constant 0 : index
    %c0_14 = arith.constant 0 : index
    %13 = vector.load %arg6[%c0_13, %c0_14] : memref<1x128xf32, #tpu.memory_space<vmem>>, vector<1x128xf32>
    %14 = vector.broadcast %13 : vector<1x128xf32> to vector<16x128xf32>
    %15 = arith.addf %12, %14 : vector<16x128xf32>
    %c0_15 = arith.constant 0 : index
    %c0_16 = arith.constant 0 : index
    %16 = vector.load %arg7[%c0_15, %c0_16] : memref<16x128xf32, #tpu.memory_space<vmem>>, vector<16x128xf32>
    tpu.vector_store %arg7[%c0_15, %c0_16], %15 {strides = array<i32>} : memref<16x128xf32, #tpu.memory_space<vmem>>, vector<16x128xf32>,
    return
  }
  func.func @transform_0(%arg0: i32) -> (i32, i32) {
    %c0_i32 = arith.constant 0 : i32
    %c0_i32_0 = arith.constant 0 : i32
    %c0_i32_1 = arith.constant 0 : i32
    return %c0_i32, %c0_i32_0 : i32, i32
  }
  func.func @transform_1(%arg0: i32) -> (i32, i32, i32) {
    %c0_i32 = arith.constant 0 : i32
    %c0_i32_0 = arith.constant 0 : i32
    %c0_i32_1 = arith.constant 0 : i32
    return %c0_i32, %arg0, %c0_i32_0 : i32, i32, i32
  }
  func.func @transform_2(%arg0: i32) -> (i32, i32, i32) {
    %c0_i32 = arith.constant 0 : i32
    %c0_i32_0 = arith.constant 0 : i32
    %c0_i32_1 = arith.constant 0 : i32
    %c0_i32_2 = arith.constant 0 : i32
    return %c0_i32, %c0_i32_0, %c0_i32_1 : i32, i32, i32
  }
  func.func @transform_3(%arg0: i32) -> (i32, i32) {
    %c0_i32 = arith.constant 0 : i32
    %c0_i32_0 = arith.constant 0 : i32
    %c0_i32_1 = arith.constant 0 : i32
    return %c0_i32, %c0_i32_0 : i32, i32
  }
  func.func @transform_4(%arg0: i32) -> (i32, i32) {
    %c0_i32 = arith.constant 0 : i32
    %c0_i32_0 = arith.constant 0 : i32
    %c0_i32_1 = arith.constant 0 : i32
    return %c0_i32, %c0_i32_0 : i32, i32
  }
  func.func @transform_5(%arg0: i32) -> (i32, i32) {
    %c0_i32 = arith.constant 0 : i32
    %c0_i32_0 = arith.constant 0 : i32
    %c0_i32_1 = arith.constant 0 : i32
    return %c0_i32, %c0_i32_0 : i32, i32
  }
  func.func @transform_6(%arg0: i32) -> (i32, i32) {
    %c0_i32 = arith.constant 0 : i32
    %c0_i32_0 = arith.constant 0 : i32
    return %arg0, %c0_i32 : i32, i32
  }
}

</mosaic_0001>

<bundles_post_ra>
// kernel: cnn_forward.1
= control target key start
LH: loop header
LB: loop body
LE: loop exit
PB: predicated region body
PF: predicated region fallthrough
CT: control target
= control target key end

     0   :  { %11 = vsyncpa [#allocation5], 0  ;;  %s717_s0 = inlined_call_operand.vmem [shape: f32[32,8], index: 0, kind: input, shape index: {}]   ;;  %s718_s1 = inlined_call_operand.vmem [shape: f32[6,16,128], index: 1, kind: input, shape index: {}]   ;;  %s719_s2 = inlined_call_operand.vmem [shape: bf16[32,128,128], index: 2, kind: input, shape index: {}]   ;;  %s720_s3 = inlined_call_operand.vmem [shape: f32[1,128], index: 3, kind: input, shape index: {}]   ;;  %s721_s4 = inlined_call_operand.vmem [shape: bf16[128,128], index: 4, kind: input, shape index: {}]   ;;  %s722_s5 = inlined_call_operand.vmem [shape: f32[1,128], index: 5, kind: input, shape index: {}]   ;;  %s723_s6 = inlined_call_operand.vmem [shape: f32[16,128], index: 6, kind: output, shape index: {}]  }
   0x1   :  { %s17_s23 = sshll.u32 %s717_s0, 4  ;;  %s18_s23 = int_to_ptr.vmem [resolvable:$true] %s17_s23 }
   0x2   :  { %s533_s24 = scalar_lea.vmem %s18_s23, 512  ;;  %p538_p1 = scmp.lt.s32.totalorder %s18_s23, %s18_s23 }
   0x3   :  { %p534_p0 = scmp.ne.s32.totalorder %s18_s23, %s533_s24  ;;  %p539_p2 = scmp.lt.s32.totalorder %s533_s24, %s533_s24 }
   0x5   :  { %p540_p3 = por %p539_p2, %p538_p1 }
   0x7   :  { %p541_p4 = pnand %p540_p3, %p534_p0 }
   0x9   :  { %544 = shalt.err (!%p541_p4)
}
   0xa   :  { %s563_s25 = smov [#allocation4]   ;;  %s564_s26 = smov 128  }
   0xb   :  { %s565_s27 = smov 8  }
   0xc   :  { %23 = dma.vmem_to_smem %s18_s23, 512, %s563_s25, [#allocation5], %s564_s26, %s564_s26, %s565_s27  }
   0xd   :  { %553 = dma.done.wait [#allocation5], 512  }
   0xe   :  { %554 = vsyncadd [#allocation5], 4294966784 }
   0xf   :  { %37 = sfence }
  0x10   :  { %s608_s28 = smov 0  }
  0x11 LB: > { %s614_s0 = sshll.u32 %s557_s28, 7  ;;  %v57_v0 = vld [vmem:[%s718_s1] sm:$0xff]  ;;  %v58_v1 = vld [vmem:[%s718_s1 + $0x8] sm:$0xff]  ;;  %v403_v2 = vld [vmem:[%s718_s1 + $0x10] sm:$0xff]  ;;  %s557_s28 = sphi %s608_s28, %s44_s28  }
  0x12   : > { %s46_s29 = sld [smem:[#allocation4 + %s614_s0]]  ;;  %s47_s30 = sadd.s32 1, %s614_s0  ;;  %v404_v3 = vld [vmem:[%s718_s1 + $0x18] sm:$0xff]  ;;  %v405_v4 = vld [vmem:[%s718_s1 + $0x20] sm:$0xff]  ;;  %v406_v10 = vld [vmem:[%s718_s1 + $0x28] sm:$0xff] }
  0x13   : > { %s48_s7 = sld [smem:[#allocation4 + %s47_s30]]  ;;  %s49_s8 = sadd.s32 2, %s614_s0  ;;  %v407_v11 = vld [vmem:[%s718_s1 + $0x30] sm:$0xff]  ;;  %v408_v16 = vld [vmem:[%s718_s1 + $0x38] sm:$0xff]  ;;  %v409_v21 = vld [vmem:[%s718_s1 + $0x40] sm:$0xff] }
  0x14   : > { %s50_s9 = sld [smem:[#allocation4 + %s49_s8]]  ;;  %s51_s10 = sadd.s32 3, %s614_s0  ;;  %v410_v26 = vld [vmem:[%s718_s1 + $0x48] sm:$0xff]  ;;  %v411_v27 = vld [vmem:[%s718_s1 + $0x50] sm:$0xff]  ;;  %v412_v32 = vld [vmem:[%s718_s1 + $0x58] sm:$0xff] }
  0x15   : > { %s52_s11 = sld [smem:[#allocation4 + %s51_s10]]  ;;  %s53_s12 = sadd.s32 4, %s614_s0 }
  0x16   : > { %s621_s13 = sld [smem:[#allocation4 + %s53_s12]]  ;;  %s55_s24 = sadd.s32 5, %s614_s0 }
  0x17   : > { %s648_s0 = sld [smem:[#allocation4 + %s55_s24]] }
  0x18   : > { %v74_v5 = vstv %s46_s29 }
  0x19   : > { %v75_v6 = vmul.f32 %v74_v5, %v57_v0  ;;  %v76_v7 = vmul.f32 %v74_v5, %v58_v1  ;;  %v77_v8 = vstv %s48_s7  ;;  %v97_v9 = vmul.f32 %v403_v2, %v74_v5 }
  0x1a   : > { %v78_v12 = vmul.f32 %v403_v2, %v77_v8  ;;  %v79_v13 = vmul.f32 %v404_v3, %v77_v8  ;;  %v82_v14 = vstv %s50_s9  ;;  %v98_v15 = vmul.f32 %v404_v3, %v74_v5 }
  0x1b   : > { %v83_v17 = vmul.f32 %v405_v4, %v82_v14  ;;  %v84_v18 = vmul.f32 %v406_v10, %v82_v14  ;;  %v87_v19 = vstv %s52_s11  ;;  %v99_v20 = vmul.f32 %v405_v4, %v77_v8 }
  0x1c   : > { %v80_v22 = vadd.f32 %v78_v12, %v75_v6  ;;  %v81_v23 = vadd.f32 %v79_v13, %v76_v7  ;;  %v88_v24 = vmul.f32 %v407_v11, %v87_v19  ;;  %v89_v25 = vmul.f32 %v408_v16, %v87_v19 }
  0x1d   : > { %v92_v28 = vstv %s621_s13  ;;  %v100_v29 = vmul.f32 %v406_v10, %v77_v8  ;;  %v101_v30 = vadd.f32 %v99_v20, %v97_v9  ;;  %v103_v31 = vmul.f32 %v407_v11, %v82_v14  ;;  %s413_s13 = sshll.u32 %s557_s28, 3  ;;  %s44_s28 = sadd.s32 1, %s557_s28  }
  0x1e   : > { %v85_v33 = vadd.f32 %v83_v17, %v80_v22  ;;  %v86_v34 = vadd.f32 %v84_v18, %v81_v23  ;;  %v93_v35 = vmul.f32 %v409_v21, %v92_v28  ;;  %v94_v36 = vmul.f32 %v410_v26, %v92_v28  ;;  %s126_s17 = scalar_lea.vmem [#allocation2], %s413_s13  ;;  %p41_p5 = scmp.ge.s32.totalorder %s44_s28, 32  }
  0x1f   : > { %v102_v37 = vadd.f32 %v100_v29, %v98_v15  ;;  %v104_v38 = vmul.f32 %v408_v16, %v82_v14  ;;  %v105_v39 = vadd.f32 %v103_v31, %v101_v30  ;;  %v107_v40 = vmul.f32 %v409_v21, %v87_v19  ;;  %v414_v63 = vld [vmem:[%s720_s3] ss:$0 sm:$0xff] (%p41_p5)  ;;  %s671_s20 = smov (%p41_p5), 0  }
  0x20   : > { %v90_v41 = vadd.f32 %v88_v24, %v85_v33  ;;  %v91_v42 = vadd.f32 %v89_v25, %v86_v34  ;;  %v108_v43 = vmul.f32 %v410_v26, %v87_v19  ;;  %v111_v44 = vmul.f32 %v411_v27, %v92_v28  ;;  %135 = vst [vmem:[#allocation3] sm:$0xff] (%p41_p5), %v414_v63 }
  0x21   : > { %v106_v45 = vadd.f32 %v104_v38, %v102_v37  ;;  %v109_v46 = vadd.f32 %v107_v40, %v105_v39  ;;  %v112_v47 = vmul.f32 %v412_v32, %v92_v28  ;;  %v117_v52 = vstv %s648_s0  ;;  %136 = vst [vmem:[#allocation3 + $0x8] sm:$0xff] (%p41_p5), %v414_v63 }
  0x22   : > { %v95_v48 = vadd.f32 %v93_v35, %v90_v41  ;;  %v96_v49 = vadd.f32 %v94_v36, %v91_v42 }
  0x23   : > { %v110_v50 = vadd.f32 %v108_v43, %v106_v45  ;;  %v113_v51 = vadd.f32 %v111_v44, %v109_v46 }
  0x25   : > { %v114_v53 = vadd.f32 %v112_v47, %v110_v50  ;;  %v115_v54 = vmax.f32 %v95_v48, %v113_v51 }
  0x27   : > { %v116_v55 = vmax.f32 %v96_v49, %v114_v53  ;;  %v118_v56 = vadd.f32 %v117_v52, %v115_v54 }
  0x29   : > { %v119_v57 = vadd.f32 %v117_v52, %v116_v55  ;;  %v120_v58 = vmul.f32 0.01, %v118_v56 }
  0x2b   : > { %v121_v59 = vmul.f32 0.01, %v119_v57  ;;  %v122_v60 = vmax.f32 %v118_v56, %v120_v58  ;;  %43 = sbr.rel (!%p41_p5) target bundleno = 17 (0x11), region = 70 }
  0x2d   : > { %v123_v61 = vmax.f32 %v119_v57, %v121_v59 }
  0x2f   : > { %v124_v62 = vpack.c.bf16 %v123_v61, %v122_v60 }
  0x31   : > { %127 = vst [vmem:[%s126_s17] sm:$0xff] %v124_v62 }
  0x32 LB: > { %v566_v0 = vmov 0.0   ;;  %vm567_vm0 = vmmov 0   ;;  %s435_s28 = sshll.u32 %s561_s20, 6  ;;  %s415_s3 = sshll.u32 %s561_s20, 3  ;;  %v143_v10 = vld [vmem:[#allocation3] sm:$0xff]  ;;  %v144_v12 = vld [vmem:[#allocation3 + $0x8] sm:$0xff]  ;;  %s561_s20 = sphi %s671_s20, %s142_s20  }
  0x33   : > { %454 = vmatprep.subr.bf16.mxu0 %v566_v0  ;;  %470 = vmatprep.mubr.msk.bf16.mxu0 %vm567_vm0, %v566_v0  ;;  %s150_s22 = scalar_lea.vmem %s719_s2, %s435_s28  ;;  %s146_s23 = scalar_lea.vmem [#allocation2], %s415_s3 }
  0x34   : > { %v517_v1 = vld [vmem:[%s150_s22] sm:$0xff]   ;;  %v518_v2 = vld [vmem:[%s150_s22 + $0x8] sm:$0xff]   ;;  %v519_v3 = vld [vmem:[%s150_s22 + $0x10] sm:$0xff]   ;;  %s142_s20 = sadd.s32 1, %s561_s20  }
  0x35   : > { %455 = vmatpush3.bf16.msra.mxu0 %v517_v1  ;;  %v520_v4 = vld [vmem:[%s150_s22 + $0x18] sm:$0xff]   ;;  %v521_v5 = vld [vmem:[%s150_s22 + $0x20] sm:$0xff]   ;;  %v522_v6 = vld [vmem:[%s150_s22 + $0x28] sm:$0xff]   ;;  %p139_p6 = scmp.ge.s32.totalorder %s142_s20, 32  }
  0x36   : > { %456 = vmatprep.subr.bf16.mxu0 %v566_v0  ;;  %v523_v7 = vld [vmem:[%s150_s22 + $0x30] sm:$0xff]   ;;  %v524_v8 = vld [vmem:[%s150_s22 + $0x38] sm:$0xff]   ;;  %v525_v18 = vld [vmem:[%s721_s4] sm:$0xff] (%p139_p6)   ;;  %v568_v19 = vmov (%p139_p6), 0.0   ;;  %vm569_vm1 = vmmov (%p139_p6), 0  }
  0x37   :  { %v526_v20 = vld [vmem:[%s721_s4 + $0x8] sm:$0xff] (%p139_p6)   ;;  %v527_v21 = vld [vmem:[%s721_s4 + $0x10] sm:$0xff] (%p139_p6)   ;;  %v528_v22 = vld [vmem:[%s721_s4 + $0x18] sm:$0xff] (%p139_p6)  }
  0x38   : > { %v147_v9 = vld [vmem:[%s146_s23] sm:$0xff]  ;;  %v530_v24 = vld [vmem:[%s721_s4 + $0x28] sm:$0xff] (%p139_p6)   ;;  %v531_v29 = vld [vmem:[%s721_s4 + $0x30] sm:$0xff] (%p139_p6)  }
  0x39   : > { %457 = vmatpush3.bf16.msra.mxu0 %v518_v2  ;;  %v529_v23 = vld [vmem:[%s721_s4 + $0x20] sm:$0xff] (%p139_p6)   ;;  %v532_v32 = vld [vmem:[%s721_s4 + $0x38] sm:$0xff] (%p139_p6)  }
  0x3a   : > { %458 = vmatprep.subr.bf16.mxu0 %v566_v0  ;;  %v426_v34 = vld [vmem:[%s722_s5] ss:$0 sm:$0xff] (%p139_p6) }
  0x3d   : > { %459 = vmatpush3.bf16.msra.mxu0 %v519_v3 }
  0x3e   : > { %460 = vmatprep.subr.bf16.mxu0 %v566_v0 }
  0x41   : > { %461 = vmatpush3.bf16.msra.mxu0 %v520_v4 }
  0x42   : > { %462 = vmatprep.subr.bf16.mxu0 %v566_v0 }
  0x45   : > { %463 = vmatpush3.bf16.msra.mxu0 %v521_v5 }
  0x46   : > { %464 = vmatprep.subr.bf16.mxu0 %v566_v0 }
  0x49   : > { %465 = vmatpush3.bf16.msra.mxu0 %v522_v6 }
  0x4a   : > { %466 = vmatprep.subr.bf16.mxu0 %v566_v0 }
  0x4d   : > { %467 = vmatpush3.bf16.msra.mxu0 %v523_v7 }
  0x4e   : > { %468 = vmatprep.subr.bf16.mxu0 %v566_v0 }
  0x51   : > { %469 = vmatpush3.bf16.msra.mxu0 %v524_v8 }
  0x52   :  { %474 = vmatprep.subr.bf16.mxu0 (%p139_p6), %v568_v19 }
  0x54   : > { %471 = vmatmul.mubr.bf16.vlgmr.msra.gmra.mrb[0].mxu0 %v147_v9 }
  0x55   :  { %475 = vmatpush3.bf16.msra.mxu0 (%p139_p6), %v525_v18  ;;  %490 = vmatprep.mubr.msk.bf16.mxu0 (%p139_p6), %vm569_vm1, %v568_v19 }
  0x56   :  { %476 = vmatprep.subr.bf16.mxu0 (%p139_p6), %v568_v19 }
  0x59   :  { %477 = vmatpush3.bf16.msra.mxu0 (%p139_p6), %v526_v20 }
  0x5a   :  { %478 = vmatprep.subr.bf16.mxu0 (%p139_p6), %v568_v19 }
  0x5d   :  { %479 = vmatpush3.bf16.msra.mxu0 (%p139_p6), %v527_v21 }
  0x5e   :  { %480 = vmatprep.subr.bf16.mxu0 (%p139_p6), %v568_v19 }
  0x61   :  { %481 = vmatpush3.bf16.msra.mxu0 (%p139_p6), %v528_v22 }
  0x62   :  { %482 = vmatprep.subr.bf16.mxu0 (%p139_p6), %v568_v19 }
  0x65   :  { %483 = vmatpush3.bf16.msra.mxu0 (%p139_p6), %v529_v23 }
  0x66   :  { %484 = vmatprep.subr.bf16.mxu0 (%p139_p6), %v568_v19 }
  0x69   :  { %485 = vmatpush3.bf16.msra.mxu0 (%p139_p6), %v530_v24 }
  0x6a   :  { %486 = vmatprep.subr.bf16.mxu0 (%p139_p6), %v568_v19 }
  0x6d   :  { %487 = vmatpush3.bf16.msra.mxu0 (%p139_p6), %v531_v29 }
  0x6e   :  { %488 = vmatprep.subr.bf16.mxu0 (%p139_p6), %v568_v19 }
  0x71   :  { %489 = vmatpush3.bf16.msra.mxu0 (%p139_p6), %v532_v32 }
 0x126   :  { %141 = sbr.rel (!%p139_p6) target bundleno = 50 (0x32), region = 81 }
 0x127   : > { %v249_v11 = vpop.f32.mrb[0].mxu0 }
 0x128   : > { %v256_v13 = vadd.f32 %v249_v11, %v143_v10  ;;  %v472_v14 = vpop.f32.mrb[1].mxu0 }
 0x129   : > { %v252_v15 = vpop.f32.mrb[2].mxu0 }
 0x12a   : > { %258 = vst [vmem:[#allocation3] sm:$0xff] %v256_v13  ;;  %v257_v16 = vadd.f32 %v252_v15, %v144_v12  ;;  %v473_v17 = vpop.f32.mrb[3].mxu0 }
 0x12c   : > { %259 = vst [vmem:[#allocation3 + $0x8] sm:$0xff] %v257_v16 }
 0x131   :  { %v260_v25 = vld [vmem:[#allocation3] sm:$0xff] }
 0x132   :  { %v262_v27 = vmul.f32 0.01, %v260_v25 }
 0x133   :  { %v261_v26 = vld [vmem:[#allocation3 + $0x8] sm:$0xff] }
 0x134   :  { %v263_v28 = vmul.f32 0.01, %v261_v26  ;;  %v264_v30 = vmax.f32 %v260_v25, %v262_v27 }
 0x136   :  { %v265_v31 = vmax.f32 %v261_v26, %v263_v28 }
 0x138   :  { %v266_v33 = vpack.c.bf16 %v265_v31, %v264_v30 }
 0x13a   :  { %491 = vmatmul.mubr.bf16.vlgmr.msra.gmra.mrb[0].mxu0 %v266_v33 }
 0x20d   :  { %v372_v35 = vpop.f32.mrb[0].mxu0 }
 0x20e   :  { %v373_v36 = vadd.f32 %v426_v34, %v372_v35  ;;  %v492_v37 = vpop.f32.mrb[1].mxu0 }
 0x20f   :  { %v375_v38 = vpop.f32.mrb[2].mxu0 }
 0x210   :  { %379 = vst [vmem:[%s723_s6] sm:$0xff] %v373_v36  ;;  %v376_v39 = vadd.f32 %v426_v34, %v375_v38  ;;  %v493_v40 = vpop.f32.mrb[3].mxu0 }
 0x212   :  { %380 = vst [vmem:[%s723_s6 + $0x8] sm:$0xff] %v376_v39 }
 0x213   :  { %385 = vsyncpa [#allocation5], 1 }

</bundles_post_ra>
